<compile_context>
chip_gen: v6e
topology: v6e:2x2x1
jax: 0.10.0
libtpu: 0.0.40
codegen_flags: <defaults>
</compile_context>

<pallas_src>
import functools
import math

import jax
import jax.numpy as jnp
from jax import lax
from jax.experimental import pallas as pl
from jax.experimental.pallas import tpu as pltpu

_ON_TPU = jax.default_backend() == "tpu"

# Double-buffered (x + out + pe) budget; fits default scoped VMEM on v5e/v6e/v7x.
_VMEM_BUDGET_BYTES = 12 * 1024 * 1024


def make_pos_encoding(max_len: int, dim_model: int) -> jnp.ndarray:
    """Builds the [max_len, dim_model] sinusoidal table exactly as the PyTorch __init__."""
    positions = jnp.arange(max_len, dtype=jnp.float32)[:, None]              # (max_len, 1)
    division_term = jnp.exp(
        jnp.arange(0, dim_model, 2, dtype=jnp.float32) * (-math.log(10000.0) / dim_model)
    )                                                                        # (dim_model//2,)
    pe = jnp.zeros((max_len, dim_model), dtype=jnp.float32)
    pe = pe.at[:, 0::2].set(jnp.sin(positions * division_term))
    pe = pe.at[:, 1::2].set(jnp.cos(positions * division_term))
    return pe


def _broadcast_pe(pe_block, batch: int):
    """(tS, D) -> (tS, B*D): replicate the per-position row across the folded batch axis.
    Lane-dim concatenation of 128-multiple pieces -> layout-friendly, no relayout."""
    if batch == 1:
        return pe_block
    return jnp.concatenate([pe_block] * batch, axis=-1)


# --------------------------------------------------------------------------------------
# Kernels (all operate on the flattened (tS, B*D) x/out blocks and an (tS, D) f32 pe block)
# --------------------------------------------------------------------------------------

def _make_eval_kernel(batch: int):
    def kernel(x_ref, pe_ref, o_ref):
        pe_wide = _broadcast_pe(pe_ref[...], batch)                  # (tS, B*D) f32
        y = x_ref[...].astype(jnp.float32) + pe_wide
        o_ref[...] = y.astype(o_ref.dtype)
    return kernel


def _dropout_consts(dropout_p: float):
    threshold = min(max(int(round(dropout_p * (2.0 ** 32))), 0), 2 ** 32 - 1)
    scale = 1.0 / (1.0 - dropout_p) if dropout_p < 1.0 else 0.0
    return threshold, scale


def _make_train_kernel_hw(batch: int, dropout_p: float):
    """Training-mode kernel using the TPU hardware PRNG (preferred on real TPUs)."""
    threshold, scale = _dropout_consts(dropout_p)

    def kernel(seed_ref, x_ref, pe_ref, o_ref):
        pe_wide = _broadcast_pe(pe_ref[...], batch)
        y = x_ref[...].astype(jnp.float32) + pe_wide

        # One hardware seed per grid tile; random bits ride the (cheap) PRNG path
        # instead of ~30 VPU integer ops/element. Mask depends on (seed, tile_s).
        pltpu.prng_seed(seed_ref[0] + pl.program_id(0))
        bits = pltpu.prng_random_bits(y.shape)
        if bits.dtype != jnp.uint32:
            bits = pltpu.bitcast(bits, jnp.uint32)

        keep = bits >= jnp.uint32(threshold)                         # P(keep) = 1 - p
        o_ref[...] = jnp.where(keep, y * jnp.float32(scale),
                               jnp.float32(0.0)).astype(o_ref.dtype)

    return kernel


def _mix32(x):
    """splitmix32-style 32-bit finalizer; pure jnp ops (fallback path only)."""
    x = x ^ (x >> 16)
    x = x * jnp.uint32(0x7FEB352D)
    x = x ^ (x >> 15)
    x = x * jnp.uint32(0x846CA68B)
    x = x ^ (x >> 16)
    return x


def _make_train_kernel_hash(tile_s: int, batch: int, dim: int, dropout_p: float):
    """Non-TPU (interpret/CPU) fallback: counter-based hash, tile-size invariant.
    NOTE: the uint32 global counter wraps for tensors with > 2^32 elements."""
    threshold, scale = _dropout_consts(dropout_p)
    lane = batch * dim

    def kernel(seed_ref, x_ref, pe_ref, o_ref):
        pe_wide = _broadcast_pe(pe_ref[...], batch)
        y = x_ref[...].astype(jnp.float32) + pe_wide

        shape = (tile_s, lane)
        row = lax.broadcasted_iota(jnp.uint32, shape, 0)
        col = lax.broadcasted_iota(jnp.uint32, shape, 1)
        base = (pl.program_id(0) * tile_s).astype(jnp.uint32) * jnp.uint32(lane)
        counter = base + row * jnp.uint32(lane) + col                # == ((s*B + b)*D + d)

        seed_u = seed_ref[0].astype(jnp.uint32) * jnp.uint32(0x9E3779B9)
        bits = _mix32(counter ^ seed_u)

        keep = bits >= jnp.uint32(threshold)
        o_ref[...] = jnp.where(keep, y * jnp.float32(scale),
                               jnp.float32(0.0)).astype(o_ref.dtype)

    return kernel


# --------------------------------------------------------------------------------------
# Wrapper
# --------------------------------------------------------------------------------------

def _choose_tile_s(S: int, B: int, D: int, itemsize: int) -> int:
    """Rows (sequence positions) per tile of the flattened (S, B*D) view.

    Lane dim is B*D (multiple of 128), sublane dim is tS -> no padding waste, so the
    footprint estimate is exact: double-buffered x + out (+ f32 pe) per row.
    """
    if S <= 8:
        return S
    lane = B * D
    per_row = 2 * (2 * lane * itemsize + D * 4)      # 2 buffers * (x row + out row + pe row)
    rows = _VMEM_BUDGET_BYTES // max(1, per_row)
    rows = min(rows, 2048)                           # big tiles amortize ~0.35 us/step overhead
    if S >= 32:
        rows = min(rows, pl.cdiv(S, 4))              # >= 4 grid steps -> both v7x TCs get work
    rows = min(rows, S)
    return max(8, (rows // 8) * 8)                   # sublane-aligned


@functools.partial(jax.jit, static_argnames=("dropout_p", "training", "tile_s"))
def positional_encoding_forward(token_embedding, pos_encoding, seed,
                                dropout_p: float = 0.1, training: bool = False,
                                tile_s=None):
    """token_embedding: (S, B, D); pos_encoding: (max_len, D) f32; seed: (1,) int32."""
    S, B, D = token_embedding.shape
    dtype = token_embedding.dtype
    assert D % 128 == 0, "dim_model must be a multiple of 128 for lane-dense tiles"

    # pe stays f32 (matches the PyTorch f32 table, avoids bf16 double rounding);
    # broadcast across batch happens inside the kernel, so pe HBM traffic is x/B.
    pe_s = pos_encoding[:S]

    # Fold the (small) batch axis into lanes: free, contiguous reshape. Removes the
    # 2 -> 8/16 sublane padding that the old (tS, B, D) blocking suffered.
    x2 = token_embedding.reshape(S, B * D)

    tS = int(tile_s) if tile_s is not None else _choose_tile_s(S, B, D, dtype.itemsize)
    grid = (pl.cdiv(S, tS),)
    compiler_params = pltpu.CompilerParams(dimension_semantics=("parallel",))

    apply_dropout = bool(training) and float(dropout_p) > 0.0

    if not apply_dropout:
        # Eval / p==0: bare add, no seed plumbing, no scalar prefetch.
        out2 = pl.pallas_call(
            _make_eval_kernel(B),
            out_shape=jax.ShapeDtypeStruct((S, B * D), dtype),
            grid_spec=pltpu.PrefetchScalarGridSpec(
                num_scalar_prefetch=0,
                grid=grid,
                in_specs=[pl.BlockSpec((tS, B * D), lambda i: (i, 0)),
                          pl.BlockSpec((tS, D), lambda i: (i, 0))],
                out_specs=pl.BlockSpec((tS, B * D), lambda i: (i, 0)),
            ),
            compiler_params=compiler_params,
        )(x2, pe_s)
        return out2.reshape(S, B, D)

    if _ON_TPU:
        kernel = _make_train_kernel_hw(B, float(dropout_p))
    else:
        kernel = _make_train_kernel_hash(tS, B, D, float(dropout_p))

    out2 = pl.pallas_call(
        kernel,
        out_shape=jax.ShapeDtypeStruct((S, B * D), dtype),
        grid_spec=pltpu.PrefetchScalarGridSpec(
            num_scalar_prefetch=1,            # seed lives in SMEM
            grid=grid,
            in_specs=[pl.BlockSpec((tS, B * D), lambda i, seed_ref: (i, 0)),
                      pl.BlockSpec((tS, D), lambda i, seed_ref: (i, 0))],
            out_specs=pl.BlockSpec((tS, B * D), lambda i, seed_ref: (i, 0)),
        ),
        compiler_params=compiler_params,
    )(seed, x2, pe_s)
    return out2.reshape(S, B, D)


if __name__ == "__main__":
    # Small transformer-ish shapes: seq=16, batch=2, dim_model=128 (lane-dense), max_len=32.
    S, B, D = 16, 2, 128
    MAX_LEN = 32
    DROPOUT_P = 0.1

    key = jax.random.PRNGKey(0)
    x = jax.random.normal(key, (S, B, D), dtype=jnp.float32)
    pe = make_pos_encoding(MAX_LEN, D)
    seed = jnp.array([1234], dtype=jnp.int32)

    ref = x + pe[:S][:, None, :]

    # Eval mode (dropout is identity, as in model.eval()): exact semantics, auto tile size.
    out_eval = positional_encoding_forward(x, pe, seed, dropout_p=DROPOUT_P, training=False)
    jax.block_until_ready(out_eval)
    assert out_eval.shape == (S, B, D)
    assert jnp.allclose(out_eval, ref, atol=1e-6), "eval-mode mismatch vs reference"

    # Eval again with an explicit small tile so the grid has >1 step.
    out_eval_t = positional_encoding_forward(x, pe, seed, dropout_p=DROPOUT_P,
                                             training=False, tile_s=8)
    jax.block_until_ready(out_eval_t)
    assert jnp.allclose(out_eval_t, ref, atol=1e-6), "tiled eval mismatch vs reference"

    # Training mode: dropout (zeroed with prob p, survivors scaled by 1/(1-p));
    # tile_s=8 -> grid of 2 to exercise per-tile random bits.
    out_train = positional_encoding_forward(x, pe, seed, dropout_p=DROPOUT_P,
                                            training=True, tile_s=8)
    jax.block_until_ready(out_train)
    scale = 1.0 / (1.0 - DROPOUT_P)
    scaled = ref * scale
    is_zero = jnp.abs(out_train) <= 1e-6
    is_scaled = jnp.abs(out_train - scaled) <= 1e-4 * (1.0 + jnp.abs(scaled))
    assert bool(jnp.all(is_zero | is_scaled)), "training-mode dropout output inconsistent"
    keep_frac = float(jnp.mean((~is_zero).astype(jnp.float32)))
    assert 0.70 < keep_frac < 0.99, f"keep fraction {keep_frac} inconsistent with p={DROPOUT_P}"

    # Determinism: same seed + same tiling -> identical mask.
    out_train2 = positional_encoding_forward(x, pe, seed, dropout_p=DROPOUT_P,
                                             training=True, tile_s=8)
    jax.block_until_ready(out_train2)
    assert bool(jnp.array_equal(out_train, out_train2)), "dropout not deterministic per seed"

    print("KERNEL_OK")
</pallas_src>

<mosaic_0001>
module attributes {stable_mosaic.version = 11 : i64} {
  func.func @kernel(%arg0: i32, %arg1: memref<16x256xf32, #tpu.memory_space<vmem>>, %arg2: memref<16x128xf32, #tpu.memory_space<vmem>>, %arg3: memref<16x256xf32, #tpu.memory_space<vmem>>) attributes {dimension_semantics = [#tpu.dimension_semantics<parallel>], iteration_bounds = array<i64: 1>, scalar_prefetch = 0 : i64, scratch_operands = 0 : i64, tpu.core_type = #tpu.core_type<tc>, window_params = [{transform_indices = @transform_0, window_bounds = array<i64: 16, 256>}, {transform_indices = @transform_1, window_bounds = array<i64: 16, 128>}, {transform_indices = @transform_2, window_bounds = array<i64: 16, 256>}]} {
    %c0 = arith.constant 0 : index
    %c0_0 = arith.constant 0 : index
    %0 = vector.load %arg2[%c0, %c0_0] : memref<16x128xf32, #tpu.memory_space<vmem>>, vector<16x128xf32>
    %1 = tpu.concatenate %0, %0 in 1 : vector<16x128xf32>, vector<16x128xf32> -> vector<16x256xf32>
    %c0_1 = arith.constant 0 : index
    %c0_2 = arith.constant 0 : index
    %2 = vector.load %arg1[%c0_1, %c0_2] : memref<16x256xf32, #tpu.memory_space<vmem>>, vector<16x256xf32>
    %3 = arith.addf %2, %1 : vector<16x256xf32>
    %c0_3 = arith.constant 0 : index
    %c0_4 = arith.constant 0 : index
    %4 = vector.load %arg3[%c0_3, %c0_4] : memref<16x256xf32, #tpu.memory_space<vmem>>, vector<16x256xf32>
    tpu.vector_store %arg3[%c0_3, %c0_4], %3 {strides = array<i32>} : memref<16x256xf32, #tpu.memory_space<vmem>>, vector<16x256xf32>,
    return
  }
  func.func @transform_0(%arg0: i32) -> (i32, i32) {
    %c0_i32 = arith.constant 0 : i32
    %c0_i32_0 = arith.constant 0 : i32
    return %arg0, %c0_i32 : i32, i32
  }
  func.func @transform_1(%arg0: i32) -> (i32, i32) {
    %c0_i32 = arith.constant 0 : i32
    %c0_i32_0 = arith.constant 0 : i32
    return %arg0, %c0_i32 : i32, i32
  }
  func.func @transform_2(%arg0: i32) -> (i32, i32) {
    %c0_i32 = arith.constant 0 : i32
    %c0_i32_0 = arith.constant 0 : i32
    return %arg0, %c0_i32 : i32, i32
  }
}

</mosaic_0001>

<bundles_post_ra>
// kernel: positional_encoding_forward.1
= control target key start
LH: loop header
LB: loop body
LE: loop exit
PB: predicated region body
PF: predicated region fallthrough
CT: control target
= control target key end

     0   :  { %s74_s0 = inlined_call_operand.vmem [shape: f32[16,256], index: 0, kind: input, shape index: {}]   ;;  %s75_s1 = inlined_call_operand.vmem [shape: f32[16,128], index: 1, kind: input, shape index: {}]   ;;  %s76_s2 = inlined_call_operand.vmem [shape: f32[16,256], index: 2, kind: output, shape index: {}]  }
   0x1   :  { %v11_v0 = vld [vmem:[%s75_s1] sm:$0xff]  ;;  %v14_v2 = vld [vmem:[%s74_s0 + $0x8] sm:$0xff]  ;;  %v15_v6 = vld [vmem:[%s74_s0 + $0x10] sm:$0xff] }
   0x2   :  { %v13_v1 = vld [vmem:[%s74_s0] sm:$0xff]  ;;  %v18_v4 = vadd.f32 %v14_v2, %v11_v0  ;;  %v12_v5 = vld [vmem:[%s75_s1 + $0x8] sm:$0xff]  ;;  %v16_v7 = vld [vmem:[%s74_s0 + $0x18] sm:$0xff] }
   0x3   :  { %v17_v3 = vadd.f32 %v13_v1, %v11_v0  ;;  %v19_v8 = vadd.f32 %v15_v6, %v12_v5  ;;  %v20_v9 = vadd.f32 %v16_v7, %v12_v5 }
   0x4   :  { %22 = vst [vmem:[%s76_s2 + $0x8] sm:$0xff] %v18_v4 }
   0x5   :  { %21 = vst [vmem:[%s76_s2] sm:$0xff] %v17_v3  ;;  %23 = vst [vmem:[%s76_s2 + $0x10] sm:$0xff] %v19_v8 }
   0x6   :  { %24 = vst [vmem:[%s76_s2 + $0x18] sm:$0xff] %v20_v9 }

</bundles_post_ra>
